<compile_context>
chip_gen: v7x
topology: tpu7x:2x2x1
jax: 0.10.0
libtpu: 0.0.40
codegen_flags: <defaults>
</compile_context>

<pallas_src>
import functools

import jax
import jax.numpy as jnp
from jax import lax
from jax.experimental import pallas as pl
from jax.experimental.pallas import tpu as pltpu


def _round_up(a, b):
    return (a + b - 1) // b * b


def _graph_learn_kernel(x_ref, xt_ref, adj_ref, ni_ref, nj_ref, out_ref, *,
                        low, high, eps):
    # [tm, D] @ [D, tn] -> [tm, tn] on the MXU (RHS pre-transposed outside).
    dots = jnp.dot(x_ref[...], xt_ref[...], preferred_element_type=jnp.float32)

    # denom = max(||x_i|| * ||x_j||, eps); norms precomputed in the wrapper,
    # broadcast [tm,1] * [1,tn] here.
    denom = jnp.maximum(ni_ref[...] * nj_ref[...], eps)

    # Divide-free thresholding (denom strictly positive -> order preserved).
    add = dots > high * denom          # cos > high
    rm = dots < low * denom            # cos < low
    adj_b = adj_ref[...] != 0

    # new_adj = (add | adj) ^ ((add | adj) & rm)  ==  (add | adj) & ~rm
    keep = (add | adj_b) & jnp.logical_not(rm)
    out_ref[...] = keep.astype(jnp.float32)

    # refine_adj = new_adj - diag(diag(new_adj)): only diagonal tiles (tm==tn).
    @pl.when(pl.program_id(0) == pl.program_id(1))
    def _():
        tm, tn = out_ref.shape
        row = lax.broadcasted_iota(jnp.int32, (tm, tn), 0)
        col = lax.broadcasted_iota(jnp.int32, (tm, tn), 1)
        out_ref[...] = jnp.where(row == col, 0.0, out_ref[...])


def cosine_graph_learn(semantic_x, adj, low_sim_threshold=0.2,
                       high_sim_threshold=0.8, *, tile=512):
    """Pallas equivalent of old_LowHigh_S_CosineGraphLearnModule.forward."""
    assert tile % 128 == 0, "tile must be a multiple of 128"
    x = jnp.asarray(semantic_x).astype(jnp.float32)
    n, d = x.shape

    # Pick a square tile (lane-dense, 128-multiple) and pad N up to it.
    n_pad = _round_up(max(n, 1), 128)
    t = min(int(tile), n_pad)
    n_pad = _round_up(n, t)
    pad_n = n_pad - n

    x_pad = jnp.pad(x, ((0, pad_n), (0, 0))) if pad_n else x
    xt = x_pad.T                                                  # [D, N_pad]

    adj_i8 = (jnp.asarray(adj) != 0).astype(jnp.int8)
    adj_pad = jnp.pad(adj_i8, ((0, pad_n), (0, pad_n))) if pad_n else adj_i8

    # Precompute row norms once (padded rows are zero -> norm 0 -> no edges).
    norms_col = jnp.sqrt(jnp.sum(x_pad * x_pad, axis=-1, keepdims=True))  # [N_pad, 1]
    norms_row = norms_col.reshape(1, n_pad)                               # [1, N_pad]

    kernel = functools.partial(
        _graph_learn_kernel,
        low=float(low_sim_threshold),
        high=float(high_sim_threshold),
        eps=1e-8,
    )

    grid = (n_pad // t, n_pad // t)
    out = pl.pallas_call(
        kernel,
        out_shape=jax.ShapeDtypeStruct((n_pad, n_pad), jnp.float32),
        grid=grid,
        in_specs=[
            pl.BlockSpec((t, d), lambda i, j: (i, 0)),      # x row block
            pl.BlockSpec((d, t), lambda i, j: (0, j)),      # x^T col block
            pl.BlockSpec((t, t), lambda i, j: (i, j)),      # adj tile (int8)
            pl.BlockSpec((t, 1), lambda i, j: (i, 0)),      # ||x_i||
            pl.BlockSpec((1, t), lambda i, j: (0, j)),      # ||x_j||
        ],
        out_specs=pl.BlockSpec((t, t), lambda i, j: (i, j)),
        compiler_params=pltpu.CompilerParams(
            dimension_semantics=("parallel", "parallel")),
    )(x_pad, xt, adj_pad, norms_col, norms_row)

    return out[:n, :n]


def _reference(semantic_x, adj, low=0.2, high=0.8):
    """Plain-JAX reference mirroring the PyTorch forward."""
    x = jnp.asarray(semantic_x).astype(jnp.float32)
    norms = jnp.linalg.norm(x, axis=-1)
    denom = jnp.maximum(norms[:, None] * norms[None, :], 1e-8)
    cos = jnp.dot(x, x.T, precision=jax.lax.Precision.HIGHEST) / denom
    add = (cos > high).astype(jnp.int32)
    rm = (cos < low).astype(jnp.int32)
    adj_i = jnp.asarray(adj).astype(jnp.int32)
    tmp = add | adj_i
    new_adj = tmp ^ (tmp & rm)
    new_adj = new_adj - jnp.diag(jnp.diag(new_adj))
    return new_adj.astype(jnp.float32)


def _make_inputs(key, n, d, dup_pairs=()):
    """Sign-vector features so cosine values sit well away from 0.2 / 0.8."""
    k1, k2 = jax.random.split(key)
    x = jnp.where(jax.random.uniform(k1, (n, d)) > 0.5, 1.0, -1.0)
    x = x.astype(jnp.float32)
    for dst, src in dup_pairs:          # plant near-duplicates -> cos == 1.0
        x = x.at[dst].set(x[src])
    adj = (jax.random.uniform(k2, (n, n)) > 0.5).astype(jnp.int32)
    return x, adj


if __name__ == "__main__":
    key = jax.random.PRNGKey(0)
    k_a, k_b = jax.random.split(key)

    # Small single-tile case.
    N, D = 16, 32
    semantic_x, adj = _make_inputs(k_a, N, D, dup_pairs=((3, 0), (7, 5)))
    out = jax.block_until_ready(cosine_graph_learn(semantic_x, adj))
    ref = _reference(semantic_x, adj)
    assert out.shape == (N, N) and out.dtype == jnp.float32
    assert jnp.allclose(out, ref), "Pallas output mismatch vs reference (N=16)"

    # Ragged, multi-tile case (exercises padding, grid and pl.when(i==j)).
    N2, D2 = 200, 64
    x2, adj2 = _make_inputs(k_b, N2, D2, dup_pairs=((11, 2), (150, 40)))
    out2 = jax.block_until_ready(cosine_graph_learn(x2, adj2, tile=128))
    ref2 = _reference(x2, adj2)
    assert out2.shape == (N2, N2)
    assert jnp.allclose(out2, ref2), "Pallas output mismatch vs reference (N=200)"

    print("KERNEL_OK")
</pallas_src>

<mosaic_0001>
module attributes {stable_mosaic.version = 11 : i64} {
  func.func @_graph_learn_kernel(%arg0: i32, %arg1: i32, %arg2: memref<128x32xf32, #tpu.memory_space<vmem>>, %arg3: memref<32x128xf32, #tpu.memory_space<vmem>>, %arg4: memref<128x128xi8, #tpu.memory_space<vmem>>, %arg5: memref<128x1xf32, #tpu.memory_space<vmem>>, %arg6: memref<1x128xf32, #tpu.memory_space<vmem>>, %arg7: memref<128x128xf32, #tpu.memory_space<vmem>>) attributes {dimension_semantics = [#tpu.dimension_semantics<parallel>, #tpu.dimension_semantics<parallel>], iteration_bounds = array<i64: 1, 1>, scalar_prefetch = 0 : i64, scratch_operands = 0 : i64, tpu.core_type = #tpu.core_type<tc>, window_params = [{transform_indices = @transform_0, window_bounds = array<i64: 128, 32>}, {transform_indices = @transform_1, window_bounds = array<i64: 32, 128>}, {transform_indices = @transform_2, window_bounds = array<i64: 128, 128>}, {transform_indices = @transform_3, window_bounds = array<i64: 128, 1>}, {transform_indices = @transform_4, window_bounds = array<i64: 1, 128>}, {transform_indices = @transform_5, window_bounds = array<i64: 128, 128>}]} {
    %c0 = arith.constant 0 : index
    %c0_0 = arith.constant 0 : index
    %0 = vector.load %arg2[%c0, %c0_0] : memref<128x32xf32, #tpu.memory_space<vmem>>, vector<128x32xf32>
    %c0_1 = arith.constant 0 : index
    %c0_2 = arith.constant 0 : index
    %1 = vector.load %arg3[%c0_1, %c0_2] : memref<32x128xf32, #tpu.memory_space<vmem>>, vector<32x128xf32>
    %cst = arith.constant dense<0.000000e+00> : vector<128x128xf32>
    %2 = tpu.matmul %0, %1, %cst {dimension_numbers = #tpu.dot_dimension_numbers<[1], [0], [0], [1], [0, 0, 1, 1], [], []>} : vector<128x32xf32>, vector<32x128xf32>, vector<128x128xf32> -> vector<128x128xf32>
    %c0_3 = arith.constant 0 : index
    %c0_4 = arith.constant 0 : index
    %3 = vector.load %arg5[%c0_3, %c0_4] : memref<128x1xf32, #tpu.memory_space<vmem>>, vector<128x1xf32>
    %c0_5 = arith.constant 0 : index
    %c0_6 = arith.constant 0 : index
    %4 = vector.load %arg6[%c0_5, %c0_6] : memref<1x128xf32, #tpu.memory_space<vmem>>, vector<1x128xf32>
    %5 = vector.broadcast %3 : vector<128x1xf32> to vector<128x128xf32>
    %6 = vector.broadcast %4 : vector<1x128xf32> to vector<128x128xf32>
    %7 = arith.mulf %5, %6 : vector<128x128xf32>
    %cst_7 = arith.constant 9.99999993E-9 : f32
    %8 = vector.broadcast %cst_7 : f32 to vector<128x128xf32>
    %9 = arith.maximumf %7, %8 : vector<128x128xf32>
    %cst_8 = arith.constant 8.000000e-01 : f32
    %10 = vector.broadcast %cst_8 : f32 to vector<128x128xf32>
    %11 = arith.mulf %10, %9 : vector<128x128xf32>
    %12 = arith.cmpf ogt, %2, %11 : vector<128x128xf32>
    %cst_9 = arith.constant 2.000000e-01 : f32
    %13 = vector.broadcast %cst_9 : f32 to vector<128x128xf32>
    %14 = arith.mulf %13, %9 : vector<128x128xf32>
    %15 = arith.cmpf olt, %2, %14 : vector<128x128xf32>
    %c0_10 = arith.constant 0 : index
    %c0_11 = arith.constant 0 : index
    %16 = vector.load %arg4[%c0_10, %c0_11] : memref<128x128xi8, #tpu.memory_space<vmem>>, vector<128x128xi8>
    %c0_i8 = arith.constant 0 : i8
    %17 = vector.broadcast %c0_i8 : i8 to vector<128x128xi8>
    %18 = arith.cmpi ne, %16, %17 : vector<128x128xi8>
    %19 = arith.ori %12, %18 : vector<128x128xi1>
    %cst_12 = arith.constant dense<true> : vector<128x128xi1>
    %20 = arith.xori %15, %cst_12 : vector<128x128xi1>
    %21 = arith.andi %19, %20 : vector<128x128xi1>
    %22 = arith.extui %21 : vector<128x128xi1> to vector<128x128xi32>
    %23 = arith.sitofp %22 : vector<128x128xi32> to vector<128x128xf32>
    %c0_13 = arith.constant 0 : index
    %c0_14 = arith.constant 0 : index
    %24 = vector.load %arg7[%c0_13, %c0_14] : memref<128x128xf32, #tpu.memory_space<vmem>>, vector<128x128xf32>
    tpu.vector_store %arg7[%c0_13, %c0_14], %23 {strides = array<i32>} : memref<128x128xf32, #tpu.memory_space<vmem>>, vector<128x128xf32>,
    %25 = arith.cmpi eq, %arg0, %arg1 : i32
    %26 = arith.extui %25 : i1 to i32
    %c0_i32 = arith.constant 0 : i32
    %27 = arith.cmpi ne, %26, %c0_i32 : i32
    scf.if %27 {
      %28 = tpu.iota {dimensions = array<i32: 0>} : vector<128x128xi32>
      %29 = tpu.iota {dimensions = array<i32: 1>} : vector<128x128xi32>
      %30 = arith.cmpi eq, %28, %29 : vector<128x128xi32>
      %c0_15 = arith.constant 0 : index
      %c0_16 = arith.constant 0 : index
      %31 = vector.load %arg7[%c0_15, %c0_16] : memref<128x128xf32, #tpu.memory_space<vmem>>, vector<128x128xf32>
      %cst_17 = arith.constant 0.000000e+00 : f32
      %32 = vector.broadcast %cst_17 : f32 to vector<128x128xf32>
      %33 = arith.select %30, %32, %31 : vector<128x128xi1>, vector<128x128xf32>
      %c0_18 = arith.constant 0 : index
      %c0_19 = arith.constant 0 : index
      %34 = vector.load %arg7[%c0_18, %c0_19] : memref<128x128xf32, #tpu.memory_space<vmem>>, vector<128x128xf32>
      tpu.vector_store %arg7[%c0_18, %c0_19], %33 {strides = array<i32>} : memref<128x128xf32, #tpu.memory_space<vmem>>, vector<128x128xf32>,
    } else {
    }
    return
  }
  func.func @transform_0(%arg0: i32, %arg1: i32) -> (i32, i32) {
    %c0_i32 = arith.constant 0 : i32
    %c0_i32_0 = arith.constant 0 : i32
    return %arg0, %c0_i32 : i32, i32
  }
  func.func @transform_1(%arg0: i32, %arg1: i32) -> (i32, i32) {
    %c0_i32 = arith.constant 0 : i32
    %c0_i32_0 = arith.constant 0 : i32
    return %c0_i32, %arg1 : i32, i32
  }
  func.func @transform_2(%arg0: i32, %arg1: i32) -> (i32, i32) {
    %c0_i32 = arith.constant 0 : i32
    return %arg0, %arg1 : i32, i32
  }
  func.func @transform_3(%arg0: i32, %arg1: i32) -> (i32, i32) {
    %c0_i32 = arith.constant 0 : i32
    %c0_i32_0 = arith.constant 0 : i32
    return %arg0, %c0_i32 : i32, i32
  }
  func.func @transform_4(%arg0: i32, %arg1: i32) -> (i32, i32) {
    %c0_i32 = arith.constant 0 : i32
    %c0_i32_0 = arith.constant 0 : i32
    return %c0_i32, %arg1 : i32, i32
  }
  func.func @transform_5(%arg0: i32, %arg1: i32) -> (i32, i32) {
    %c0_i32 = arith.constant 0 : i32
    return %arg0, %arg1 : i32, i32
  }
}

</mosaic_0001>

<bundles_post_ra>
// kernel: tpu_custom_call.1
= control target key start
LH: loop header
LB: loop body
LE: loop exit
PB: predicated region body
PF: predicated region fallthrough
CT: control target
= control target key end

     0   :  { %vm43_vm0 = vcmask 261120   ;;  %v888_v7 = vmov 0   ;;  %s1620_s0 = inlined_call_operand.vmem [shape: f32[128,32], index: 0, kind: input, shape index: {}]   ;;  %s1621_s1 = inlined_call_operand.vmem [shape: f32[32,128], index: 1, kind: input, shape index: {}]   ;;  %s1622_s2 = inlined_call_operand.vmem [shape: s8[128,128], index: 2, kind: input, shape index: {}]   ;;  %s1623_s3 = inlined_call_operand.vmem [shape: f32[128,1], index: 3, kind: input, shape index: {}]   ;;  %s1624_s4 = inlined_call_operand.vmem [shape: f32[1,128], index: 4, kind: input, shape index: {}]   ;;  %s1625_s5 = inlined_call_operand.hbm [shape: f32[128,128], index: 5, kind: output, shape index: {}]  }
   0x1   :  { %v39_v0 = vld [vmem:[%s1621_s1] sm:$0xff]  ;;  %v40_v1 = vld [vmem:[%s1621_s1 + $0x8] sm:$0xff]  ;;  %v41_v2 = vld [vmem:[%s1621_s1 + $0x10] sm:$0xff]  ;;  %863 = vset.pattern.permute.xlu1 %v888_v7  ;;  %862 = vset.pattern.permute.xlu0 %v888_v7 }
   0x2   :  { %v844_v3 = vpack.c.bf16 %v40_v1, %v39_v0  ;;  %v42_v4 = vld [vmem:[%s1621_s1 + $0x18] sm:$0xff]  ;;  %v23_v5 = vld [vmem:[%s1620_s0] sm:$0xff]  ;;  %v239_v9 = vld [vmem:[%s1623_s3 + $0x10] sm:$0xff] }
   0x3   :  { %v31_v6 = vld [vmem:[%s1620_s0 + $0x40] sm:$0xff]  ;;  %v848_v8 = vpack.c.bf16 %v42_v4, %v41_v2  ;;  %820 = vmatprep.mubr.msk.f32.mxu0 %vm43_vm0, %v23_v5  ;;  %266 = vperm.xlu1 %863, %v239_v9   ;;  %v24_v11 = vld [vmem:[%s1620_s0 + $0x8] sm:$0xff]  ;;  %v25_v13 = vld [vmem:[%s1620_s0 + $0x10] sm:$0xff] }
   0x4   :  { %832 = vmatprep.mubr.msk.f32.mxu1 %vm43_vm0, %v31_v6  ;;  %845 = vmatprep.subr.bf16.mxu0 %v844_v3  ;;  %v237_v10 = vld [vmem:[%s1623_s3] sm:$0xff]  ;;  %v32_v12 = vld [vmem:[%s1620_s0 + $0x48] sm:$0xff]  ;;  %v33_v14 = vld [vmem:[%s1620_s0 + $0x50] sm:$0xff] }
   0x5   :  { %852 = vmatprep.subr.bf16.mxu1 %v844_v3  ;;  %847 = vmatpush3.bf16.msra.mxu0 %v844_v3  ;;  %v240_v15 = vld [vmem:[%s1623_s3 + $0x18] sm:$0xff]  ;;  %v238_v16 = vld [vmem:[%s1623_s3 + $0x8] sm:$0xff] }
   0x6   :  { %854 = vmatpush3.bf16.msra.mxu1 %v844_v3  ;;  %849 = vmatprep.subr.bf16.mxu0 %v848_v8  ;;  %v26_v17 = vld [vmem:[%s1620_s0 + $0x18] sm:$0xff] }
   0x7   :  { %853 = vmatprep.subr.bf16.mxu1 %v848_v8  ;;  %256 = vperm.xlu0 %862, %v237_v10   ;;  %v34_v18 = vld [vmem:[%s1620_s0 + $0x58] sm:$0xff] }
   0x9   :  { %851 = vmatpush3.bf16.msra.mxu0 %v848_v8 }
   0xa   :  { %855 = vmatpush3.bf16.msra.mxu1 %v848_v8 }
   0xc   :  { %821 = vmatmul.mubr.msk.f32.vlgmr.msra.gmra.mrb[0].mxu0 %vm43_vm0, %v24_v11 }
   0xd   :  { %833 = vmatmul.mubr.msk.f32.vlgmr.msra.gmra.mrb[0].mxu1 %vm43_vm0, %v32_v12  ;;  %823 = vmatprep.mubr.msk.f32.mxu0 %vm43_vm0, %v25_v13 }
   0xe   :  { %835 = vmatprep.mubr.msk.f32.mxu1 %vm43_vm0, %v33_v14 }
   0xf   :  { %10 = vsyncpa [#allocation3], 0  ;;  %v27_v19 = vld [vmem:[%s1620_s0 + $0x20] sm:$0xff]  ;;  %271 = vperm.xlu1 %863, %v240_v15   ;;  %261 = vperm.xlu0 %862, %v238_v16   ;;  %v242_v21 = vld [vmem:[%s1623_s3 + $0x28] sm:$0xff]  ;;  %v660_v61 = vlaneseq }
  0x10   :  { %v35_v20 = vld [vmem:[%s1620_s0 + $0x60] sm:$0xff]  ;;  %824 = vmatmul.mubr.msk.f32.gmra.mrb[2].mxu0 %vm43_vm0, %v26_v17  ;;  %v28_v23 = vld [vmem:[%s1620_s0 + $0x28] sm:$0xff]  ;;  %v29_v25 = vld [vmem:[%s1620_s0 + $0x30] sm:$0xff] }
  0x11   :  { %v241_v22 = vld [vmem:[%s1623_s3 + $0x20] sm:$0xff]  ;;  %836 = vmatmul.mubr.msk.f32.gmra.mrb[2].mxu1 %vm43_vm0, %v34_v18  ;;  %826 = vmatprep.mubr.msk.f32.mxu0 %vm43_vm0, %v27_v19  ;;  %v36_v24 = vld [vmem:[%s1620_s0 + $0x68] sm:$0xff]  ;;  %v37_v26 = vld [vmem:[%s1620_s0 + $0x70] sm:$0xff]  ;;  %v1077_v9 = vshrl.u32 %v660_v61, 7 }
  0x12   :  { %838 = vmatprep.mubr.msk.f32.mxu1 %vm43_vm0, %v35_v20  ;;  %v244_v27 = vld [vmem:[%s1623_s3 + $0x38] sm:$0xff]  ;;  %v243_v28 = vld [vmem:[%s1623_s3 + $0x30] sm:$0xff]  ;;  %v246_v31 = vld [vmem:[%s1623_s3 + $0x48] sm:$0xff] }
  0x13   :  { %281 = vperm.xlu1 %863, %v242_v21   ;;  %276 = vperm.xlu0 %862, %v241_v22   ;;  %v30_v29 = vld [vmem:[%s1620_s0 + $0x38] sm:$0xff]  ;;  %v245_v32 = vld [vmem:[%s1623_s3 + $0x40] sm:$0xff]  ;;  %v247_v34 = vld [vmem:[%s1623_s3 + $0x50] sm:$0xff]  ;;  %v1093_v21 = vadd.s32 8, %v1077_v9  ;;  %v1095_v22 = vand.u32 127, %v660_v61 }
  0x14   :  { %827 = vmatmul.mubr.msk.f32.gmra.mrb[4].mxu0 %vm43_vm0, %v28_v23  ;;  %v38_v30 = vld [vmem:[%s1620_s0 + $0x78] sm:$0xff]  ;;  %v250_v35 = vld [vmem:[%s1623_s3 + $0x68] sm:$0xff]  ;;  %v249_v36 = vld [vmem:[%s1623_s3 + $0x60] sm:$0xff] }
  0x15   :  { %839 = vmatmul.mubr.msk.f32.gmra.mrb[4].mxu1 %vm43_vm0, %v36_v24  ;;  %829 = vmatprep.mubr.msk.f32.mxu0 %vm43_vm0, %v29_v25  ;;  %v248_v33 = vld [vmem:[%s1623_s3 + $0x58] sm:$0xff]  ;;  %v251_v38 = vld [vmem:[%s1623_s3 + $0x70] sm:$0xff]  ;;  %v436_v39 = vld [vmem:[%s1622_s2] sm:$0xff]  ;;  %vm680_vm14 = vcmp.eq.s32.totalorder %v1093_v21, %v1095_v22 }
  0x16   :  { %841 = vmatprep.mubr.msk.f32.mxu1 %vm43_vm0, %v37_v26  ;;  %v252_v37 = vld [vmem:[%s1623_s3 + $0x78] sm:$0xff]  ;;  %v438_v40 = vld [vmem:[%s1622_s2 + $0x10] sm:$0xff]  ;;  %vm440_vm1 = vnez %v436_v39  ;;  %v437_v60 = vld [vmem:[%s1622_s2 + $0x8] sm:$0xff] }
  0x17   :  { %291 = vperm.xlu1 %863, %v244_v27   ;;  %286 = vperm.xlu0 %862, %v243_v28   ;;  %vm442_vm2 = vnez %v438_v40  ;;  %v444_v41 = vsel %vm440_vm1, 16843009, %v888_v7  ;;  %vm441_vm4 = vnez %v437_v60  ;;  %v439_v1 = vld [vmem:[%s1622_s2 + $0x18] sm:$0xff]  ;;  %v1086_v17 = vld [vmem:[%s1624_s4] ss:$0 sm:$0xff]  ;;  %s891_s4 = smov [#allocation2]  }
  0x18   :  { %830 = vmatmul.mubr.msk.f32.gmra.mrb[6].mxu0 %vm43_vm0, %v30_v29  ;;  %v446_v43 = vsel %vm442_vm2, 16843009, %v888_v7  ;;  %v449_v44 = vunpack.c.1.s8 %v444_v41  ;;  %v448_v50 = vunpack.c.0.s8 %v444_v41  ;;  %v451_v53 = vunpack.c.3.s8 %v444_v41  ;;  %s748_s19 = sshll.u32 %s891_s4, 4  ;;  %s749_s19 = int_to_ptr.vmem [resolvable:$true] %s748_s19 }
  0x19   :  { %842 = vmatmul.mubr.msk.f32.gmra.mrb[6].mxu1 %vm43_vm0, %v38_v30  ;;  %v457_v45 = vunpack.c.1.s8 %v446_v43  ;;  %v456_v52 = vunpack.c.0.s8 %v446_v43  ;;  %v459_v54 = vunpack.c.3.s8 %v446_v43  ;;  %v450_v59 = vunpack.c.2.s8 %v444_v41  ;;  %s864_s20 = scalar_lea.vmem %s749_s19, 2048  ;;  %p869_p1 = scmp.lt.s32.totalorder %s749_s19, %s749_s19 }
  0x1a   :  { %v466_v48 = vpack.c.b16 %v449_v44, %v449_v44  ;;  %v464_v58 = vpack.c.b16 %v448_v50, %v448_v50  ;;  %v470_v63 = vpack.c.b16 %v451_v53, %v451_v53  ;;  %v458_v4 = vunpack.c.2.s8 %v446_v43  ;;  %p865_p0 = scmp.ne.s32.totalorder %s749_s19, %s864_s20  ;;  %p870_p2 = scmp.lt.s32.totalorder %s864_s20, %s864_s20 }
  0x1b   :  { %301 = vperm.xlu1 %863, %v246_v31   ;;  %296 = vperm.xlu0 %862, %v245_v32   ;;  %v482_v49 = vpack.c.b16 %v457_v45, %v457_v45  ;;  %v480_v62 = vpack.c.b16 %v456_v52, %v456_v52  ;;  %v486_v0 = vpack.c.b16 %v459_v54, %v459_v54  ;;  %v1080_v10 = vsel %vm441_vm4, 16843009, %v888_v7 }
  0x1c   :  { %v467_v51 = vpack.c.b8 %v466_v48, %v466_v48  ;;  %v465_v2 = vpack.c.b8 %v464_v58, %v464_v58  ;;  %v468_v3 = vpack.c.b16 %v450_v59, %v450_v59  ;;  %vm443_vm6 = vnez %v439_v1  ;;  %p871_p3 = por %p870_p2, %p869_p1 }
  0x1d   :  { %v483_v57 = vpack.c.b8 %v482_v49, %v482_v49  ;;  %v481_v12 = vpack.c.b8 %v480_v62, %v480_v62  ;;  %v471_v13 = vpack.c.b8 %v470_v63, %v470_v63  ;;  %v487_v14 = vpack.c.b8 %v486_v0, %v486_v0 }
  0x1e   :  { %vm497_vm3 = vnez %v467_v51  ;;  %vm496_vm7 = vnez %v465_v2  ;;  %v469_v15 = vpack.c.b8 %v468_v3, %v468_v3  ;;  %v484_v16 = vpack.c.b16 %v458_v4, %v458_v4  ;;  %p872_p4 = pnand %p871_p3, %p865_p0 }
  0x1f   :  { %311 = vperm.xlu1 %863, %v248_v33   ;;  %306 = vperm.xlu0 %862, %v247_v34   ;;  %vm505_vm5 = vnez %v483_v57  ;;  %v513_v8 = vsel %vm497_vm3, 16843009, %v888_v7  ;;  %v453_v19 = vunpack.c.1.s8 %v1080_v10  ;;  %v1090_v20 = vsel %vm443_vm6, 16843009, %v888_v7 }
  0x20   :  { %v521_v11 = vsel %vm505_vm5, 16843009, %v888_v7  ;;  %v529_v18 = vunpack.c.0.s8 %v513_v8  ;;  %v512_v24 = vsel %vm496_vm7, 16843009, %v888_v7  ;;  %vm504_vm8 = vnez %v481_v12 }
  0x21   :  { %v537_v23 = vunpack.c.0.s8 %v521_v11  ;;  %vm499_vm9 = vnez %v471_v13  ;;  %vm507_vm10 = vnez %v487_v14  ;;  %vm498_vm11 = vnez %v469_v15 }
  0x22   :  { %v485_v28 = vpack.c.b8 %v484_v16, %v484_v16  ;;  %v461_v29 = vunpack.c.1.s8 %v1090_v20  ;;  %vm1103_vm12 = vcmp.ne.s32.totalorder %v529_v18, 0  ;;  %v474_v32 = vpack.c.b16 %v453_v19, %v453_v19 }
  0x23   :  { %321 = vperm.xlu1 %863, %v250_v35   ;;  %316 = vperm.xlu0 %862, %v249_v36   ;;  %v1108_v33 = vadd.s32 72, %v1077_v9  ;;  %v528_v34 = vunpack.c.0.s8 %v512_v24  ;;  %v520_v35 = vsel %vm504_vm8, 16843009, %v888_v7  ;;  %vm1111_vm13 = vcmp.ne.s32.totalorder %v537_v23, 0 }
  0x24   :  { %v1120_v39 = vsel %vm498_vm11, 16843009, %v888_v7  ;;  %vm506_vm15 = vnez %v485_v28  ;;  %v490_v43 = vpack.c.b16 %v461_v29, %v461_v29  ;;  %v536_v45 = vunpack.c.0.s8 %v520_v35 }
  0x25   :  { %v475_v48 = vpack.c.b8 %v474_v32, %v474_v32  ;;  %v452_v49 = vunpack.c.0.s8 %v1080_v10  ;;  %vm1127_vm0 = vcmp.ne.s32.totalorder %v528_v34, 0  ;;  %v1132_v52 = vadd.s32 64, %v1077_v9 }
  0x26   :  { %vm688_vm1 = vcmp.eq.s32.totalorder %v1108_v33, %v1095_v22  ;;  %v530_v57 = vunpack.c.0.s8 %v1120_v39  ;;  %v1143_v58 = vsel %vm506_vm15, 16843009, %v888_v7  ;;  %v491_v62 = vpack.c.b8 %v490_v43, %v490_v43 }
  0x27   :  { %331 = vperm.xlu1 %863, %v252_v37   ;;  %326 = vperm.xlu0 %862, %v251_v38   ;;  %v515_v37 = vsel %vm499_vm9, 16843009, %v888_v7  ;;  %v1117_v38 = vsel %vm507_vm10, 16843009, %v888_v7  ;;  %vm1145_vm2 = vcmp.ne.s32.totalorder %v536_v45, 0  ;;  %vm1149_vm3 = vnez %v475_v48 }
  0x28   :  { %v539_v53 = vunpack.c.0.s8 %v1117_v38  ;;  %v472_v4 = vpack.c.b16 %v452_v49, %v452_v49  ;;  %v460_v8 = vunpack.c.0.s8 %v1090_v20  ;;  %vm679_vm6 = vcmp.eq.s32.totalorder %v1077_v9, %v1095_v22 }
  0x29   :  { %v538_v18 = vunpack.c.0.s8 %v1143_v58  ;;  %vm889_vm9 = vmmov 1   ;;  %v1187_v28 = vsel %vm1149_vm3, 16843009, %v888_v7  ;;  %v890_v38 = vmov 0.0  }
  0x2a   :  { %v473_v35 = vpack.c.b8 %v472_v4, %v472_v4  ;;  %v488_v45 = vpack.c.b16 %v460_v8, %v460_v8  ;;  %v533_v21 = vunpack.c.0.s8 %v1187_v28  ;;  %v668_v3 = vadd.s32 56, %v1077_v9 }
  0x82   :  { %v1057_v42 = vpop.permute.xlu1 %266 }
  0x86   :  { %v1060_v46 = vpop.permute.xlu0 %256 }
  0x87   :  { %v340_v40 = vmul.f32 %v1086_v17, %v1060_v46  ;;  %v531_v46 = vunpack.c.0.s8 %v515_v37 }
  0x89   :  { %v356_v59 = vmax.f32 %v340_v40, 1e-08  ;;  %vm1177_vm15 = vcmp.ne.s32.totalorder %v531_v46, 0  ;;  %v1233_v46 = vmul.f32 %v1086_v17, %v1057_v42 }
  0x8b   :  { %v372_v19 = vmul.f32 0.8, %v356_v59  ;;  %v404_v29 = vmul.f32 0.2, %v356_v59 }
  0x8e   :  { %v1062_v47 = vpop.permute.xlu1 %271  ;;  %v262_v55 = vpop.permute.xlu0 %261 }
  0x8f   :  { %v341_v25 = vmul.f32 %v1086_v17, %v262_v55  ;;  %v1139_v55 = vadd.s32 24, %v1077_v9  ;;  %v1156_v11 = vmul.f32 %v1086_v17, %v1062_v47  ;;  %v1169_v47 = vadd.s32 88, %v1077_v9 }
  0x91   :  { %v357_v41 = vmax.f32 %v341_v25, 1e-08  ;;  %v359_v37 = vmax.f32 %v1156_v11, 1e-08  ;;  %v489_v11 = vpack.c.b8 %v488_v45, %v488_v45 }
  0x92   :  { %v1064_v56 = vpop.permute.xlu1 %281  ;;  %v1072_v5 = vpop.permute.xlu0 %276 }
  0x93   :  { %v373_v60 = vmul.f32 0.8, %v357_v41  ;;  %v405_v61 = vmul.f32 0.2, %v357_v41 }
  0x96   :  { %v1074_v6 = vpop.permute.xlu1 %291  ;;  %v1099_v26 = vpop.permute.xlu0 %286 }
  0x97   :  { %v347_v28 = vmul.f32 %v1086_v17, %v1074_v6 }
  0x9a   :  { %v302_v27 = vpop.permute.xlu1 %301  ;;  %v297_v50 = vpop.permute.xlu0 %296 }
  0x9b   :  { %v349_v30 = vmul.f32 %v1086_v17, %v302_v27  ;;  %v348_v54 = vmul.f32 %v1086_v17, %v297_v50  ;;  %v1182_v27 = vadd.s32 16, %v1077_v9  ;;  %v1229_v50 = vadd.s32 80, %v1077_v9 }
  0x9d   :  { %v365_v44 = vmax.f32 %v349_v30, 1e-08  ;;  %v364_v15 = vmax.f32 %v348_v54, 1e-08 }
  0x9e   :  { %v312_v23 = vpop.permute.xlu1 %311  ;;  %v307_v59 = vpop.permute.xlu0 %306 }
  0x9f   :  { %v381_v63 = vmul.f32 0.8, %v365_v44  ;;  %v413_v12 = vmul.f32 0.2, %v365_v44  ;;  %v1190_v30 = vmul.f32 %v1086_v17, %v312_v23  ;;  %v380_v48 = vmul.f32 0.8, %v364_v15 }
  0xa0   :  { %v412_v54 = vmul.f32 0.2, %v364_v15  ;;  %v350_v33 = vmul.f32 %v1086_v17, %v307_v59 }
  0xa2   :  { %v317_v16 = vpop.permute.xlu0 %316 }
  0xdf   :  { %v822_v0 = vpop.f32.mrb[0].mxu0 }
  0xe0   :  { %v834_v1 = vpop.f32.mrb[0].mxu1  ;;  %vm389_vm4 = vcmp.gt.f32.partialorder %v822_v0, %v373_v60  ;;  %vm421_vm5 = vcmp.lt.f32.partialorder %v822_v0, %v405_v61  ;;  %v158_v13 = vpop.f32.mrb[1].mxu0  ;;  %v367_v60 = vmax.f32 %v1190_v30, 1e-08 }
  0xe1   :  { %v1160_v14 = vpop.f32.mrb[1].mxu1  ;;  %vm1164_vm7 = vmor %vm389_vm4, %vm1103_vm12  ;;  %vm397_vm8 = vcmp.gt.f32.partialorder %v834_v1, %v381_v63  ;;  %vm429_vm11 = vcmp.lt.f32.partialorder %v834_v1, %v413_v12  ;;  %vm1224_vm4 = vcmp.ne.s32.totalorder %v539_v53, 0  ;;  %v375_v1 = vmul.f32 0.8, %v359_v37 }
  0xe2   :  { %vm1173_vm10 = vmxor %vm421_vm5, %vm889_vm9  ;;  %vm1202_vm5 = vnez %v491_v62  ;;  %v407_v12 = vmul.f32 0.2, %v359_v37  ;;  %v383_v23 = vmul.f32 0.8, %v367_v60 }
  0xe3   :  { %vm593_vm12 = vmand %vm1164_vm7, %vm1173_vm10  ;;  %v1198_v31 = vpop.f32.mrb[2].mxu0  ;;  %vm388_vm7 = vcmp.gt.f32.partialorder %v158_v13, %v372_v19  ;;  %v1243_v53 = vsel %vm1202_vm5, 16843009, %v888_v7  ;;  %vm428_vm5 = vcmp.lt.f32.partialorder %v1160_v14, %v412_v54 }
  0xe4   :  { %v1200_v32 = vpop.f32.mrb[2].mxu1  ;;  %v777_v40 = vsel %vm593_vm12, 1.0, %v890_v38  ;;  %vm1211_vm3 = vmor %vm397_vm8, %vm1111_vm13  ;;  %v1215_v43 = vpop.f32.mrb[3].mxu0  ;;  %vm420_vm12 = vcmp.lt.f32.partialorder %v158_v13, %v404_v29  ;;  %v541_v39 = vunpack.c.0.s8 %v1243_v53  ;;  %v358_v13 = vmax.f32 %v1233_v46, 1e-08 }
  0xe5   :  { %v1217_v44 = vpop.f32.mrb[3].mxu1  ;;  %v712_v49 = vsel %vm680_vm14, 0.0, %v777_v40  ;;  %vm585_vm10 = vmxor %vm429_vm11, %vm889_vm9  ;;  %vm682_vm14 = vcmp.eq.s32.totalorder %v1139_v55, %v1095_v22  ;;  %vm396_vm11 = vcmp.gt.f32.partialorder %v1160_v14, %v380_v48  ;;  %v1320_v29 = vadd.s32 40, %v1077_v9  ;;  %v322_v46 = vpop.permute.xlu1 %321 }
  0xe6   :  { %728 = vst [vmem:[#allocation2 + $0x8] sm:$0xff] %v712_v49  ;;  %vm601_vm13 = vmand %vm1211_vm3, %vm585_vm10  ;;  %vm1259_vm3 = vnez %v473_v35  ;;  %vm690_vm10 = vcmp.eq.s32.totalorder %v1169_v47, %v1095_v22  ;;  %v345_v14 = vmul.f32 %v1086_v17, %v1064_v56  ;;  %v415_v35 = vmul.f32 0.2, %v367_v60 }
  0xe7   :  { %v785_v42 = vsel %vm601_vm13, 1.0, %v890_v38  ;;  %vm1250_vm8 = vmor %vm388_vm7, %vm1127_vm0  ;;  %v1255_v62 = vpop.f32.mrb[4].mxu0  ;;  %vm1271_vm7 = vcmp.ne.s32.totalorder %v530_v57, 0  ;;  %v455_v57 = vunpack.c.3.s8 %v1080_v10  ;;  %vm391_vm13 = vcmp.gt.f32.partialorder %v1198_v31, %v375_v1 }
  0xe8   :  { %v1257_v63 = vpop.f32.mrb[4].mxu1  ;;  %v720_v51 = vsel %vm688_vm1, 0.0, %v785_v42  ;;  %vm576_vm0 = vmxor %vm420_vm12, %vm889_vm9  ;;  %v1275_v4 = vpop.f32.mrb[5].mxu0  ;;  %v1300_v19 = vsel %vm1259_vm3, 16843009, %v888_v7  ;;  %vm1360_vm3 = vcmp.ne.s32.totalorder %v533_v21, 0  ;;  %v353_v60 = vmul.f32 %v1086_v17, %v322_v46 }
  0xe9   :  { %v1277_v8 = vpop.f32.mrb[5].mxu1  ;;  %736 = vst [vmem:[#allocation2 + $0x48] sm:$0xff] %v720_v51  ;;  %vm592_vm1 = vmand %vm1250_vm8, %vm576_vm0  ;;  %vm1334_vm0 = vnez %v489_v11  ;;  %v366_v56 = vmax.f32 %v350_v33, 1e-08  ;;  %v478_v48 = vpack.c.b16 %v455_v57, %v455_v57  ;;  %v374_v49 = vmul.f32 0.8, %v358_v13  ;;  %v332_v45 = vpop.permute.xlu1 %331 }
  0xea   :  { %v776_v15 = vsel %vm592_vm1, 1.0, %v890_v38  ;;  %vm1292_vm12 = vmor %vm396_vm11, %vm1145_vm2  ;;  %vm423_vm2 = vcmp.lt.f32.partialorder %v1198_v31, %v407_v12  ;;  %vm1315_vm11 = vcmp.ne.s32.totalorder %v538_v18, 0  ;;  %v463_v18 = vunpack.c.3.s8 %v1090_v20 }
  0xeb   :  { %v711_v24 = vsel %vm679_vm6, 0.0, %v776_v15  ;;  %vm1308_vm8 = vmxor %vm428_vm5, %vm889_vm9  ;;  %v1322_v30 = vpop.f32.mrb[6].mxu0  ;;  %vm399_vm1 = vcmp.gt.f32.partialorder %v1200_v32, %v383_v23  ;;  %v532_v59 = vunpack.c.0.s8 %v1300_v19  ;;  %v406_v53 = vmul.f32 0.2, %v358_v13 }
  0xec   :  { %v1324_v34 = vpop.f32.mrb[6].mxu1  ;;  %727 = vst [vmem:[#allocation2] sm:$0xff] %v711_v24  ;;  %vm600_vm6 = vmand %vm1292_vm12, %vm1308_vm8  ;;  %v1339_v37 = vpop.f32.mrb[7].mxu0  ;;  %vm1664_vm12 = vcmp.eq.s32.totalorder %v1132_v52, %v1095_v22  ;;  %v1371_v52 = vadd.s32 104, %v1077_v9  ;;  %v524_v31 = vsel %vm1334_vm0, 16843009, %v888_v7  ;;  %v494_v0 = vpack.c.b16 %v463_v18, %v463_v18 }
  0xed   :  { %v1341_v40 = vpop.f32.mrb[7].mxu1  ;;  %v784_v41 = vsel %vm600_vm6, 1.0, %v890_v38  ;;  %vm1348_vm5 = vmor %vm391_vm13, %vm1177_vm15  ;;  %vm431_vm6 = vcmp.lt.f32.partialorder %v1200_v32, %v415_v35  ;;  %vm689_vm13 = vcmp.eq.s32.totalorder %v1229_v50, %v1095_v22  ;;  %v361_v21 = vmax.f32 %v345_v14, 1e-08 }
  0xee   :  { %v719_v54 = vsel %vm1664_vm12, 0.0, %v784_v41  ;;  %vm579_vm8 = vmxor %vm423_vm2, %vm889_vm9  ;;  %v382_v1 = vmul.f32 0.8, %v366_v56  ;;  %vm422_vm12 = vcmp.lt.f32.partialorder %v1215_v43, %v406_v53  ;;  %v479_v11 = vpack.c.b8 %v478_v48, %v478_v48 }
  0xef   :  { %735 = vst [vmem:[#allocation2 + $0x40] sm:$0xff] %v719_v54  ;;  %vm595_vm15 = vmand %vm1348_vm5, %vm579_vm8  ;;  %vm390_vm5 = vcmp.gt.f32.partialorder %v1215_v43, %v374_v49  ;;  %vm1393_vm8 = vcmp.ne.s32.totalorder %v541_v39, 0  ;;  %v344_v12 = vmul.f32 %v1086_v17, %v1072_v5  ;;  %v414_v33 = vmul.f32 0.2, %v366_v56 }
  0xf0   :  { %v779_v42 = vsel %vm595_vm15, 1.0, %v890_v38  ;;  %vm1381_vm2 = vmor %vm399_vm1, %vm1224_vm4  ;;  %v540_v55 = vunpack.c.0.s8 %v524_v31  ;;  %v454_v32 = vunpack.c.2.s8 %v1080_v10  ;;  %v369_v57 = vmax.f32 %v353_v60, 1e-08 }
  0xf1   :  { %v714_v51 = vsel %vm682_vm14, 0.0, %v779_v42  ;;  %vm587_vm0 = vmxor %vm431_vm6, %vm889_vm9  ;;  %vm684_vm14 = vcmp.eq.s32.totalorder %v1320_v29, %v1095_v22  ;;  %vm398_vm6 = vcmp.gt.f32.partialorder %v1217_v44, %v382_v1  ;;  %v1415_v13 = vadd.s32 32, %v1077_v9 }
  0xf2   :  { %730 = vst [vmem:[#allocation2 + $0x18] sm:$0xff] %v714_v51  ;;  %vm603_vm4 = vmand %vm1381_vm2, %vm587_vm0  ;;  %v377_v15 = vmul.f32 0.8, %v361_v21  ;;  %vm1424_vm2 = vcmp.ne.s32.totalorder %v532_v59, 0  ;;  %v495_v19 = vpack.c.b8 %v494_v0, %v494_v0  ;;  %v409_v23 = vmul.f32 0.2, %v361_v21 }
  0xf3   :  { %v787_v39 = vsel %vm603_vm4, 1.0, %v890_v38  ;;  %vm1409_vm1 = vmor %vm390_vm5, %vm1271_vm7  ;;  %vm430_vm7 = vcmp.lt.f32.partialorder %v1217_v44, %v414_v33  ;;  %v352_v24 = vmul.f32 %v1086_v17, %v317_v16  ;;  %vm1433_vm0 = vnez %v479_v11  ;;  %v327_v11 = vpop.permute.xlu0 %326 }
  0xf4   :  { %v722_v10 = vsel %vm690_vm10, 0.0, %v787_v39  ;;  %vm578_vm15 = vmxor %vm422_vm12, %vm889_vm9  ;;  %v462_v43 = vunpack.c.2.s8 %v1090_v20  ;;  %v360_v2 = vmax.f32 %v344_v12, 1e-08  ;;  %vm393_vm4 = vcmp.gt.f32.partialorder %v1255_v62, %v377_v15 }
  0xf5   :  { %738 = vst [vmem:[#allocation2 + $0x58] sm:$0xff] %v722_v10  ;;  %vm594_vm5 = vmand %vm1409_vm1, %vm578_vm15  ;;  %v476_v58 = vpack.c.b16 %v454_v32, %v454_v32  ;;  %v385_v18 = vmul.f32 0.8, %v369_v57  ;;  %vm1679_vm1 = vcmp.eq.s32.totalorder %v1182_v27, %v1095_v22  ;;  %vm1455_vm10 = vcmp.ne.s32.totalorder %v540_v55, 0 }
  0xf6   :  { %v778_v14 = vsel %vm594_vm5, 1.0, %v890_v38  ;;  %vm1443_vm12 = vmor %vm398_vm6, %vm1315_vm11  ;;  %vm425_vm5 = vcmp.lt.f32.partialorder %v1255_v62, %v409_v23  ;;  %v417_v41 = vmul.f32 0.2, %v369_v57  ;;  %v519_v27 = vsel %vm1433_vm0, 16843009, %v888_v7 }
  0xf7   :  { %v713_v56 = vsel %vm1679_vm1, 0.0, %v778_v14  ;;  %vm586_vm15 = vmxor %vm430_vm7, %vm889_vm9  ;;  %vm1466_vm6 = vnez %v495_v19  ;;  %v368_v48 = vmax.f32 %v352_v24, 1e-08  ;;  %v492_v46 = vpack.c.b16 %v462_v43, %v462_v43 }
  0xf8   :  { %729 = vst [vmem:[#allocation2 + $0x10] sm:$0xff] %v713_v56  ;;  %vm602_vm11 = vmand %vm1443_vm12, %vm586_vm15  ;;  %vm401_vm12 = vcmp.gt.f32.partialorder %v1257_v63, %v385_v18  ;;  %v376_v54 = vmul.f32 0.8, %v360_v2  ;;  %vm433_vm1 = vcmp.lt.f32.partialorder %v1257_v63, %v417_v41  ;;  %v477_v25 = vpack.c.b8 %v476_v58, %v476_v58 }
  0xf9   :  { %v786_v49 = vsel %vm602_vm11, 1.0, %v890_v38  ;;  %vm1475_vm7 = vmor %vm393_vm4, %vm1360_vm3  ;;  %v408_v53 = vmul.f32 0.2, %v360_v2  ;;  %v355_v60 = vmul.f32 %v1086_v17, %v332_v45  ;;  %vm683_vm4 = vcmp.eq.s32.totalorder %v1415_v13, %v1095_v22 }
  0xfa   :  { %v721_v59 = vsel %vm689_vm13, 0.0, %v786_v49  ;;  %vm581_vm0 = vmxor %vm425_vm5, %vm889_vm9  ;;  %v535_v31 = vunpack.c.0.s8 %v519_v27  ;;  %v363_v50 = vmax.f32 %v347_v28, 1e-08  ;;  %vm392_vm15 = vcmp.gt.f32.partialorder %v1275_v4, %v376_v54 }
  0xfb   :  { %737 = vst [vmem:[#allocation2 + $0x50] sm:$0xff] %v721_v59  ;;  %vm597_vm3 = vmand %vm1475_vm7, %vm581_vm0  ;;  %v527_v42 = vsel %vm1466_vm6, 16843009, %v888_v7  ;;  %v384_v61 = vmul.f32 0.8, %v368_v48  ;;  %v493_v1 = vpack.c.b8 %v492_v46, %v492_v46  ;;  %v346_v51 = vmul.f32 %v1086_v17, %v1099_v26 }
  0xfc   :  { %v781_v21 = vsel %vm597_vm3, 1.0, %v890_v38  ;;  %vm1497_vm13 = vmor %vm401_vm12, %vm1393_vm8  ;;  %vm424_vm8 = vcmp.lt.f32.partialorder %v1275_v4, %v408_v53  ;;  %v416_v36 = vmul.f32 0.2, %v368_v48  ;;  %v673_v12 = vadd.s32 96, %v1077_v9 }
  0xfd   :  { %v716_v0 = vsel %vm684_vm14, 0.0, %v781_v21  ;;  %vm589_vm5 = vmxor %vm433_vm1, %vm889_vm9  ;;  %vm1517_vm6 = vnez %v477_v25  ;;  %v371_v63 = vmax.f32 %v355_v60, 1e-08  ;;  %vm400_vm7 = vcmp.gt.f32.partialorder %v1277_v8, %v384_v61 }
  0xfe   :  { %732 = vst [vmem:[#allocation2 + $0x28] sm:$0xff] %v716_v0  ;;  %vm605_vm11 = vmand %vm1497_vm13, %vm589_vm5  ;;  %v543_v55 = vunpack.c.0.s8 %v527_v42  ;;  %v379_v32 = vmul.f32 0.8, %v363_v50  ;;  %vm1692_vm12 = vcmp.eq.s32.totalorder %v1371_v52, %v1095_v22  ;;  %vm432_vm1 = vcmp.lt.f32.partialorder %v1277_v8, %v416_v36 }
  0xff   :  { %v789_v33 = vsel %vm605_vm11, 1.0, %v890_v38  ;;  %vm1526_vm14 = vmor %vm392_vm15, %vm1424_vm2  ;;  %vm1538_vm3 = vcmp.ne.s32.totalorder %v535_v31, 0  ;;  %v411_v5 = vmul.f32 0.2, %v363_v50  ;;  %v354_v15 = vmul.f32 %v1086_v17, %v327_v11 }
 0x100   :  { %v724_v57 = vsel %vm1692_vm12, 0.0, %v789_v33  ;;  %vm580_vm0 = vmxor %vm424_vm8, %vm889_vm9  ;;  %v518_v52 = vsel %vm1517_vm6, 16843009, %v888_v7  ;;  %vm1548_vm13 = vnez %v493_v1  ;;  %v362_v16 = vmax.f32 %v346_v51, 1e-08 }
 0x101   :  { %740 = vst [vmem:[#allocation2 + $0x68] sm:$0xff] %v724_v57  ;;  %vm596_vm2 = vmand %vm1526_vm14, %vm580_vm0  ;;  %vm395_vm5 = vcmp.gt.f32.partialorder %v1322_v30, %v379_v32  ;;  %v387_v19 = vmul.f32 0.8, %v371_v63  ;;  %vm691_vm11 = vcmp.eq.s32.totalorder %v673_v12, %v1095_v22  ;;  %v419_v24 = vmul.f32 0.2, %v371_v63 }
 0x102   :  { %v780_v10 = vsel %vm596_vm2, 1.0, %v890_v38  ;;  %vm1557_vm15 = vmor %vm400_vm7, %vm1455_vm10  ;;  %vm427_vm10 = vcmp.lt.f32.partialorder %v1322_v30, %v411_v5  ;;  %vm1573_vm14 = vcmp.ne.s32.totalorder %v543_v55, 0  ;;  %v534_v43 = vunpack.c.0.s8 %v518_v52 }
 0x103   :  { %v715_v23 = vsel %vm683_vm4, 0.0, %v780_v10  ;;  %vm588_vm8 = vmxor %vm432_vm1, %vm889_vm9  ;;  %v526_v13 = vsel %vm1548_vm13, 16843009, %v888_v7  ;;  %v370_v8 = vmax.f32 %v354_v15, 1e-08  ;;  %vm403_vm7 = vcmp.gt.f32.partialorder %v1324_v34, %v387_v19 }
 0x104   :  { %731 = vst [vmem:[#allocation2 + $0x20] sm:$0xff] %v715_v23  ;;  %vm604_vm6 = vmand %vm1557_vm15, %vm588_vm8  ;;  %v676_v14 = vadd.s32 120, %v1077_v9  ;;  %vm686_vm0 = vcmp.eq.s32.totalorder %v668_v3, %v1095_v22  ;;  %vm435_vm1 = vcmp.lt.f32.partialorder %v1324_v34, %v419_v24  ;;  %v378_v7 = vmul.f32 0.8, %v362_v16 }
 0x105   :  { %v788_v2 = vsel %vm604_vm6, 1.0, %v890_v38  ;;  %vm567_vm4 = vmor %vm395_vm5, %vm1538_vm3  ;;  %v410_v58 = vmul.f32 0.2, %v362_v16  ;;  %v542_v18 = vunpack.c.0.s8 %v526_v13  ;;  %vm550_vm15 = vcmp.ne.s32.totalorder %v534_v43, 0 }
 0x106   :  { %v723_v35 = vsel %vm691_vm11, 0.0, %v788_v2  ;;  %vm583_vm12 = vmxor %vm427_vm10, %vm889_vm9  ;;  %vm394_vm13 = vcmp.gt.f32.partialorder %v1339_v37, %v378_v7  ;;  %v667_v30 = vadd.s32 48, %v1077_v9  ;;  %vm694_vm8 = vcmp.eq.s32.totalorder %v676_v14, %v1095_v22 }
 0x107   :  { %739 = vst [vmem:[#allocation2 + $0x60] sm:$0xff] %v723_v35  ;;  %vm599_vm2 = vmand %vm567_vm4, %vm583_vm12  ;;  %vm426_vm11 = vcmp.lt.f32.partialorder %v1339_v37, %v410_v58  ;;  %v386_v34 = vmul.f32 0.8, %v370_v8  ;;  %v418_v28 = vmul.f32 0.2, %v370_v8  ;;  %vm558_vm4 = vcmp.ne.s32.totalorder %v542_v18, 0 }
 0x108   :  { %v783_v56 = vsel %vm599_vm2, 1.0, %v890_v38  ;;  %vm575_vm3 = vmor %vm403_vm7, %vm1573_vm14  ;;  %v675_v45 = vadd.s32 112, %v1077_v9  ;;  %vm685_vm12 = vcmp.eq.s32.totalorder %v667_v30, %v1095_v22 }
 0x109   :  { %v718_v20 = vsel %vm686_vm0, 0.0, %v783_v56  ;;  %vm591_vm5 = vmxor %vm435_vm1, %vm889_vm9  ;;  %vm402_vm14 = vcmp.gt.f32.partialorder %v1341_v40, %v386_v34  ;;  %vm434_vm0 = vcmp.lt.f32.partialorder %v1341_v40, %v418_v28 }
 0x10a   :  { %734 = vst [vmem:[#allocation2 + $0x38] sm:$0xff] %v718_v20  ;;  %vm607_vm10 = vmand %vm575_vm3, %vm591_vm5 }
 0x10b   :  { %v791_v41 = vsel %vm607_vm10, 1.0, %v890_v38  ;;  %vm566_vm6 = vmor %vm394_vm13, %vm550_vm15  ;;  %vm693_vm13 = vcmp.eq.s32.totalorder %v675_v45, %v1095_v22 }
 0x10c   :  { %v726_v27 = vsel %vm694_vm8, 0.0, %v791_v41  ;;  %vm582_vm7 = vmxor %vm426_vm11, %vm889_vm9 }
 0x10d   :  { %742 = vst [vmem:[#allocation2 + $0x78] sm:$0xff] %v726_v27  ;;  %vm598_vm1 = vmand %vm566_vm6, %vm582_vm7 }
 0x10e   :  { %v782_v37 = vsel %vm598_vm1, 1.0, %v890_v38  ;;  %vm574_vm2 = vmor %vm402_vm14, %vm558_vm4 }
 0x10f   :  { %v717_v44 = vsel %vm685_vm12, 0.0, %v782_v37  ;;  %vm590_vm3 = vmxor %vm434_vm0, %vm889_vm9 }
 0x110   :  { %733 = vst [vmem:[#allocation2 + $0x30] sm:$0xff] %v717_v44  ;;  %vm606_vm15 = vmand %vm574_vm2, %vm590_vm3 }
 0x111   :  { %v790_v9 = vsel %vm606_vm15, 1.0, %v890_v38 }
 0x112   :  { %v725_v48 = vsel %vm693_vm13, 0.0, %v790_v9 }
 0x113   :  { %741 = vst [vmem:[#allocation2 + $0x70] sm:$0xff] %v725_v48 }
 0x114   :  { %875 = shalt.err (!%p872_p4)
}
 0x115   :  { %s876_s23 = scalar_lea.hbm %s1625_s5, 2048 }
 0x116   :  { %p877_p5 = scmp.ne.s32.totalorder %s1625_s5, %s876_s23  ;;  %p880_p6 = scmp.lt.u32.totalorder %s876_s23, %s1625_s5 }
 0x118   :  { %p882_p7 = pnand %p880_p6, %p877_p5 }
 0x11a   :  { %885 = shalt.err (!%p882_p7)
}
 0x11b   :  { %s892_s0 = smov 128   ;;  %s893_s28 = smov 8  }
 0x11c   :  { %754 = dma.vmem_to_hbm [thread:$0]  %s749_s19, 2048, %s1625_s5, [#allocation3], %s892_s0, %s892_s0, %s893_s28  }
 0x11d   :  { %886 = dma.done.wait [#allocation3], 2048  }
 0x11e   :  { %887 = vsyncadd [#allocation3], 4294965248 }
 0x11f   :  { %758 = vsyncpa [#allocation3], 1 }

</bundles_post_ra>
